<compile_context>
chip_gen: v5e
topology: v5e:2x2
jax: 0.10.0
libtpu: 0.0.40
codegen_flags: <defaults>
</compile_context>

<pallas_src>
import functools
import math

import jax
import jax.numpy as jnp
from jax.experimental import pallas as pl
from jax.experimental.pallas import tpu as pltpu


# --------------------------- small helpers ---------------------------------

def _pick_hw_tile(hw):
    """Largest lane tile (multiple of 128, capped at 1024) dividing hw, else hw."""
    for t in (1024, 512, 256, 128):
        if hw % t == 0:
            return t
    return hw


def _largest_divisor_leq(n, cap):
    cap = max(1, min(n, cap))
    for t in range(cap, 0, -1):
        if n % t == 0:
            return t
    return 1


def _vmem_limit_bytes(block_bytes):
    """Explicit scoped-VMEM limit.  v5e defaults to 16 MiB (of 128 MiB physical) and
    is the binding constraint once tiles are raised; 32-64 MiB is safe on all of
    v5e/v6e/v7x (v7x physical VMEM is 64 MiB)."""
    return int(min(64 << 20, max(32 << 20, 4 * int(block_bytes))))


def _fold_nearest_rows(w_in_out, hs, ws, sy, sx):
    """w_in_out: (hs*sy*ws*sx, out), rows indexed by the flattened (H2, W2) pixel.
    Sums rows over each nearest-upsample pixel group so that
      upsample(q_small) @ W  ==  q_small @ fold(W)   (exact for nearest)."""
    out = w_in_out.shape[-1]
    w = w_in_out.reshape(hs, sy, ws, sx, out).sum(axis=(1, 3))
    return w.reshape(hs * ws, out)


# --------------------------- ReduceChannels kernel --------------------------

def _rc_kernel(x_ref, w1_ref, b1_ref, w2_ref, b2_ref, o_ref):
    # x_ref : (1, 1, Cin, tile)  -- channels on sublanes, pixels on lanes (bf16).
    # w*_ref: (1, Cmid, *) bf16 ; b*_ref: (1, Cmid, 1) f32.
    # o_ref : (1, 1, Cmid, tile) -- lane-dense output block.
    x = x_ref[0, 0]                                                     # (Cin, tile)
    h1 = jnp.dot(w1_ref[0], x, preferred_element_type=jnp.float32) + b1_ref[0]
    h1 = jnp.maximum(h1, 0.0)
    h2 = jnp.dot(w2_ref[0], h1.astype(jnp.bfloat16),
                 preferred_element_type=jnp.float32) + b2_ref[0]
    o_ref[0, 0] = jnp.maximum(h2, 0.0).astype(o_ref.dtype)


def reduce_channels(x_gbcl, params_list, out_dtype=jnp.bfloat16):
    """Apply G independent ReduceChannels blocks (Conv1x1+ReLU, twice).

    x_gbcl      : (Gx, B, Cin, L) with Gx == G (per-group input) or Gx == 1 (shared
                  input broadcast to every group).  L = pixels (lane axis).
    params_list : G dicts with w1 (Cmid,Cin), b1 (Cmid,), w2 (Cmid,Cmid), b2 (Cmid,).
    returns     : (G, B, Cmid, L) in out_dtype.
    """
    Gx, B, Cin, L = x_gbcl.shape
    G = len(params_list)
    assert Gx in (1, G), "input group dim must be 1 (shared) or match len(params_list)"
    Cmid = params_list[0]["w1"].shape[0]

    # bf16 MXU operands; biases stay f32 (added to the f32 accumulator).
    w1 = jnp.stack([p["w1"] for p in params_list]).astype(jnp.bfloat16)   # (G,Cmid,Cin)
    b1 = jnp.stack([p["b1"] for p in params_list])[..., None].astype(jnp.float32)
    w2 = jnp.stack([p["w2"] for p in params_list]).astype(jnp.bfloat16)   # (G,Cmid,Cmid)
    b2 = jnp.stack([p["b2"] for p in params_list])[..., None].astype(jnp.float32)
    x = x_gbcl.astype(jnp.bfloat16)

    tile = _pick_hw_tile(L)
    grid = (G, B, L // tile)
    x_map = (lambda g, b, j: (0, b, 0, j)) if Gx == 1 else (lambda g, b, j: (g, b, 0, j))

    blk_bytes = ((Cin + Cmid) * tile * 2
                 + (Cmid * Cin + Cmid * Cmid) * 2 + 2 * Cmid * 4)

    return pl.pallas_call(
        _rc_kernel,
        out_shape=jax.ShapeDtypeStruct((G, B, Cmid, L), out_dtype),
        grid_spec=pltpu.PrefetchScalarGridSpec(
            num_scalar_prefetch=0,
            grid=grid,
            in_specs=[
                pl.BlockSpec((1, 1, Cin, tile), x_map),
                pl.BlockSpec((1, Cmid, Cin), lambda g, b, j: (g, 0, 0)),
                pl.BlockSpec((1, Cmid, 1), lambda g, b, j: (g, 0, 0)),
                pl.BlockSpec((1, Cmid, Cmid), lambda g, b, j: (g, 0, 0)),
                pl.BlockSpec((1, Cmid, 1), lambda g, b, j: (g, 0, 0)),
            ],
            out_specs=pl.BlockSpec((1, 1, Cmid, tile), lambda g, b, j: (g, b, 0, j)),
        ),
        compiler_params=pltpu.CompilerParams(
            dimension_semantics=("parallel", "parallel", "parallel"),
            vmem_limit_bytes=_vmem_limit_bytes(blk_bytes)),
    )(x, w1, b1, w2, b2)


# --------------------------- attention kernel -------------------------------

def _mha_kernel(q_ref, kv_ref, wq_ref, wkv_ref, wo_ref, o_ref, *, fuse_kv):
    # q_ref : (bt, S, Dq) bf16     kv_ref : (bt, S, Dkv) bf16
    # wq_ref: (h, Dq, d_k) bf16
    # wkv_ref: (h, Dkv, 2*d_k) bf16 if fuse_kv else (h, 2, Dkv, d_k) bf16
    # wo_ref: (h, d_k, D_out) bf16  o_ref : (bt, S, D_out)
    bt, S, Dq = q_ref.shape
    Dkv = kv_ref.shape[-1]
    num_heads, _, d_k = wq_ref.shape
    D_out = wo_ref.shape[-1]
    rows = bt * S
    # Leading-dim merge: free relayout when S is a multiple of 8 (sublane-aligned).
    q2 = q_ref[...].reshape(rows, Dq)
    kv2 = kv_ref[...].reshape(rows, Dkv)
    scale = 1.0 / math.sqrt(d_k)

    def head_body(hd, acc):
        Qh = jnp.dot(q2, wq_ref[hd], preferred_element_type=jnp.float32)     # (rows,d_k)
        if fuse_kv:
            # K|V fused into one matmul (k == v input); split is lane-aligned
            # because fuse_kv is only chosen when d_k % 128 == 0.
            KVh = jnp.dot(kv2, wkv_ref[hd], preferred_element_type=jnp.float32)
            Kh, Vh = KVh[:, :d_k], KVh[:, d_k:]
        else:
            Kh = jnp.dot(kv2, wkv_ref[hd, 0], preferred_element_type=jnp.float32)
            Vh = jnp.dot(kv2, wkv_ref[hd, 1], preferred_element_type=jnp.float32)
        Qh = Qh.reshape(bt, S, d_k).astype(jnp.bfloat16)
        Kh = Kh.reshape(bt, S, d_k).astype(jnp.bfloat16)
        Vh = Vh.reshape(bt, S, d_k).astype(jnp.bfloat16)

        # scores via dot_general (contract on d_k, batch on bt) -- no in-kernel .T
        s = jax.lax.dot_general(Qh, Kh, (((2,), (2,)), ((0,), (0,))),
                                preferred_element_type=jnp.float32) * scale  # (bt,S,S)
        s = s - jnp.max(s, axis=-1, keepdims=True)
        e = jnp.exp(s)
        p = e * pl.reciprocal(jnp.sum(e, axis=-1, keepdims=True), approx=True)
        # TODO(synk): nn.Dropout(p=0.1) on attention probs modeled as eval-mode identity.

        ctx = jax.lax.dot_general(p.astype(jnp.bfloat16), Vh,
                                  (((2,), (1,)), ((0,), (0,))),
                                  preferred_element_type=jnp.float32)        # (bt,S,d_k)
        contrib = jnp.dot(ctx.reshape(rows, d_k).astype(jnp.bfloat16), wo_ref[hd],
                          preferred_element_type=jnp.float32)                # (rows,D_out)
        return acc + contrib

    # fori_loop keeps vreg live ranges flat for large h; unrolled for small fixed h.
    out = jax.lax.fori_loop(0, num_heads, head_body,
                            jnp.zeros((rows, D_out), jnp.float32),
                            unroll=(num_heads <= 2))
    o_ref[...] = out.reshape(bt, S, D_out).astype(o_ref.dtype)


def _pick_bt(B, S):
    """Batch tile: target M = bt*S ~ 512 MXU rows, but keep >= 2 grid steps when B
    allows so v7x's 2 TensorCores both get work (grid axis is 'parallel')."""
    bt = _largest_divisor_leq(B, max(1, 512 // max(1, S)))
    if B >= 2 and B // bt < 2:
        bt = _largest_divisor_leq(B, max(1, B // 2))
    return bt


def multi_head_attention(q, kv, p, h, *, q_fold=None, kv_fold=None,
                         out_dtype=jnp.float32):
    """MultiHeadAttentionBlock.forward (eval mode, mask=None) for the k == v case
    used by MultiHeadFusion.

    q  : (B, S, Dq_in)    kv : (B, S, Dkv_in)
    p  : torch nn.Linear weights (d_model, d_model), y = x @ W.T
    q_fold / kv_fold : None, or (H_small, W_small, sy, sx) meaning the given tensor
      is the PRE-upsample feature; the nearest-neighbour upsample to
      d_model = (H_small*sy)*(W_small*sx) is folded into that projection's weights.
    """
    B, S, Dq = q.shape
    Bk, Sk, Dkv = kv.shape
    assert (B, S) == (Bk, Sk), "q and k/v must agree on batch and sequence dims"
    d_model = p["wq"].shape[0]
    assert d_model % h == 0, "d_model is not divisible by h"
    d_k = d_model // h

    wq_in, wk_in, wv_in = p["wq"].T, p["wk"].T, p["wv"].T      # (in=d_model, out)
    if q_fold is not None:
        hs, ws, sy, sx = q_fold
        assert hs * ws == Dq and hs * sy * ws * sx == d_model
        wq_in = _fold_nearest_rows(wq_in, hs, ws, sy, sx)      # (Dq, d_model)
    else:
        assert Dq == d_model, "q last dim must equal d_model"
    if kv_fold is not None:
        hs, ws, sy, sx = kv_fold
        assert hs * ws == Dkv and hs * sy * ws * sx == d_model
        wk_in = _fold_nearest_rows(wk_in, hs, ws, sy, sx)
        wv_in = _fold_nearest_rows(wv_in, hs, ws, sy, sx)
    else:
        assert Dkv == d_model, "k/v last dim must equal d_model"

    # Per-head weight blocks pre-split at trace time, bf16 MXU operands.
    wq_h = jnp.transpose(wq_in.reshape(Dq, h, d_k), (1, 0, 2)).astype(jnp.bfloat16)
    wk_h = jnp.transpose(wk_in.reshape(Dkv, h, d_k), (1, 0, 2)).astype(jnp.bfloat16)
    wv_h = jnp.transpose(wv_in.reshape(Dkv, h, d_k), (1, 0, 2)).astype(jnp.bfloat16)
    wo_h = p["wo"].T.reshape(h, d_k, d_model).astype(jnp.bfloat16)

    fuse_kv = (d_k % 128 == 0)      # fused K|V only when the split is lane-aligned
    if fuse_kv:
        wkv = jnp.concatenate([wk_h, wv_h], axis=-1)            # (h, Dkv, 2*d_k)
        wkv_spec = pl.BlockSpec((h, Dkv, 2 * d_k), lambda i: (0, 0, 0))
    else:
        wkv = jnp.stack([wk_h, wv_h], axis=1)                   # (h, 2, Dkv, d_k)
        wkv_spec = pl.BlockSpec((h, 2, Dkv, d_k), lambda i: (0, 0, 0, 0))

    qb, kvb = q.astype(jnp.bfloat16), kv.astype(jnp.bfloat16)

    bt = _pick_bt(B, S)
    grid = (B // bt,)

    blk_bytes = (bt * S * (Dq + Dkv) * 2
                 + (wq_h.size + wkv.size + wo_h.size) * 2
                 + bt * S * d_model * jnp.dtype(out_dtype).itemsize)

    kernel = functools.partial(_mha_kernel, fuse_kv=fuse_kv)
    return pl.pallas_call(
        kernel,
        out_shape=jax.ShapeDtypeStruct((B, S, d_model), out_dtype),
        grid_spec=pltpu.PrefetchScalarGridSpec(
            num_scalar_prefetch=0,
            grid=grid,
            in_specs=[
                pl.BlockSpec((bt, S, Dq), lambda i: (i, 0, 0)),
                pl.BlockSpec((bt, S, Dkv), lambda i: (i, 0, 0)),
                pl.BlockSpec((h, Dq, d_k), lambda i: (0, 0, 0)),
                wkv_spec,
                pl.BlockSpec((h, d_k, d_model), lambda i: (0, 0, 0)),
            ],
            out_specs=pl.BlockSpec((bt, S, d_model), lambda i: (i, 0, 0)),
        ),
        compiler_params=pltpu.CompilerParams(
            dimension_semantics=("parallel",),
            vmem_limit_bytes=_vmem_limit_bytes(blk_bytes)),
    )(qb, kvb, wq_h, wkv, wo_h)


# --------------------------- MultiHeadFusion forward ------------------------

def _pad_rc_in(p, cin_to):
    """Zero-pad the first 1x1-conv's input-channel dim (exact: padded inputs are 0)."""
    cin = p["w1"].shape[1]
    if cin == cin_to:
        return p
    return dict(p, w1=jnp.pad(p["w1"], ((0, 0), (0, cin_to - cin))))


def multi_head_fusion_forward(params, ft_2D, ft_3D, h=1):
    B, C3, H3, W3 = ft_3D.shape
    L3 = H3 * W3
    # Lane-dense rc3d: a 1x1 conv is per-pixel, so when the small spatial extent is
    # < 128 lanes we fold batch into the lane axis (pixels and batch interchange).
    fold_batch = (L3 < 128) and (B > 1)
    if fold_batch:
        ft3_lanes = jnp.transpose(ft_3D.reshape(B, C3, L3), (1, 0, 2))
        ft3_lanes = ft3_lanes.reshape(1, 1, C3, B * L3)
    else:
        ft3_lanes = ft_3D.reshape(1, B, C3, L3)

    fts = []
    for idx, ft2D in enumerate(ft_2D):
        _, C2b, H2, W2 = ft2D[0].shape
        _, C2c, H2c, W2c = ft2D[1].shape
        assert H2 * W3 == W2 * H3, "can't upscale"
        # nn.Upsample(scale_factor=H2/H3, mode='nearest'); integer scales only here.
        assert H2 % H3 == 0 and W2 % W3 == 0, "non-integer upsample scale not supported"
        # TODO(synk): non-integer nearest scale_factor (torch supports it) not implemented.
        assert H2c * W2c == H2 * W2, "cls 2D feature must flatten to the same d_model"
        sy, sx = H2 // H3, W2 // W3
        pb, pc = params["box"][idx], params["cls"][idx]

        # --- 2D branches (box + cls) share ONE ReduceChannels pallas_call; channels
        #     stay on sublanes / pixels on lanes, Cin zero-padded to a common width.
        Cin2 = max(C2b, C2c)
        xb = ft2D[0].reshape(B, C2b, H2 * W2)
        xc = ft2D[1].reshape(B, C2c, H2c * W2c)
        if C2b < Cin2:
            xb = jnp.pad(xb, ((0, 0), (0, Cin2 - C2b), (0, 0)))
        if C2c < Cin2:
            xc = jnp.pad(xc, ((0, 0), (0, Cin2 - C2c), (0, 0)))
        x2 = jnp.stack([xb, xc])                                  # (2, B, Cin2, H2*W2)
        red2 = reduce_channels(x2, [_pad_rc_in(pb["rc2d"], Cin2),
                                    _pad_rc_in(pc["rc2d"], Cin2)])
        ft_box, ft_cls = red2[0], red2[1]                         # (B, Cmid, H2*W2) bf16

        # --- 3D branch: box + cls rc3d share ONE call at the SMALL (H3,W3) resolution
        #     (1x1 conv commutes with nearest upsample).  The upsample itself is folded
        #     into the attention projection weights below, so the scale^2-sized
        #     upsampled intermediate is never materialised.
        red3 = reduce_channels(ft3_lanes, [pb["rc3d"], pc["rc3d"]])
        Cmid = red3.shape[2]
        if fold_batch:
            red3 = jnp.transpose(red3.reshape(2, Cmid, B, L3), (0, 2, 1, 3))
        ft3_box, ft3_cls = red3[0], red3[1]                       # (B, Cmid, L3) bf16

        fold = (H3, W3, sy, sx)
        # box: attn(q=3D, k=v=2D)  -- upsample folded into W_q
        out_box = multi_head_attention(ft3_box, ft_box, pb["attn"], h, q_fold=fold)
        # cls: attn(q=2D, k=v=3D)  -- upsample folded into W_k / W_v
        out_cls = multi_head_attention(ft_cls, ft3_cls, pc["attn"], h, kv_fold=fold)

        fts.append([out_box.reshape(B, Cmid, H2, W2),
                    out_cls.reshape(B, Cmid, H2, W2)])
    return fts


# --------------------------- pure-JAX reference (torch ordering) ------------

def _rc_ref(x, p):
    y = jnp.einsum("bchw,oc->bohw", x, p["w1"]) + p["b1"][None, :, None, None]
    y = jnp.maximum(y, 0.0)
    y = jnp.einsum("bchw,oc->bohw", y, p["w2"]) + p["b2"][None, :, None, None]
    return jnp.maximum(y, 0.0)


def _mha_ref(q, k, v, p, h):
    B, S, D = q.shape
    d_k = D // h
    Q = (q @ p["wq"].T).reshape(B, S, h, d_k).transpose(0, 2, 1, 3)
    K = (k @ p["wk"].T).reshape(B, S, h, d_k).transpose(0, 2, 1, 3)
    V = (v @ p["wv"].T).reshape(B, S, h, d_k).transpose(0, 2, 1, 3)
    s = (Q @ jnp.swapaxes(K, -2, -1)) / math.sqrt(d_k)
    pr = jax.nn.softmax(s, axis=-1)
    x = (pr @ V).transpose(0, 2, 1, 3).reshape(B, S, D)
    return x @ p["wo"].T


def multi_head_fusion_reference(params, ft_2D, ft_3D, h=1):
    _, _, H3, W3 = ft_3D.shape
    fts = []
    for idx, ft2D in enumerate(ft_2D):
        _, _, H2, W2 = ft2D[0].shape
        sy, sx = H2 // H3, W2 // W3
        ft_3D_t = jnp.repeat(jnp.repeat(ft_3D, sy, axis=2), sx, axis=3)
        pb, pc = params["box"][idx], params["cls"][idx]
        ft_box = _rc_ref(ft2D[0], pb["rc2d"])
        ft_3D_box = _rc_ref(ft_3D_t, pb["rc3d"])
        B1, C1, H1, W1 = ft_3D_box.shape
        ft_cls = _rc_ref(ft2D[1], pc["rc2d"])
        ft_3D_cls = _rc_ref(ft_3D_t, pc["rc3d"])
        out_box = _mha_ref(ft_3D_box.reshape(B1, C1, -1), ft_box.reshape(B1, C1, -1),
                           ft_box.reshape(B1, C1, -1), pb["attn"], h)
        out_cls = _mha_ref(ft_cls.reshape(B1, C1, -1), ft_3D_cls.reshape(B1, C1, -1),
                           ft_3D_cls.reshape(B1, C1, -1), pc["attn"], h)
        fts.append([out_box.reshape(B1, C1, H1, W1), out_cls.reshape(B1, C1, H1, W1)])
    return fts


# --------------------------- deterministic param init -----------------------

def _uniform(key, shape, fan_in):
    bound = 1.0 / math.sqrt(fan_in)
    return jax.random.uniform(key, shape, jnp.float32, -bound, bound)


def init_reduce_channels(key, in_c, inter_c):
    k1, k2, k3, k4 = jax.random.split(key, 4)
    return dict(
        w1=_uniform(k1, (inter_c, in_c), in_c),
        b1=_uniform(k2, (inter_c,), in_c),
        w2=_uniform(k3, (inter_c, inter_c), inter_c),
        b2=_uniform(k4, (inter_c,), inter_c),
    )


def init_mhab(key, d_model):
    k1, k2, k3, k4 = jax.random.split(key, 4)
    return dict(
        wq=_uniform(k1, (d_model, d_model), d_model),
        wk=_uniform(k2, (d_model, d_model), d_model),
        wv=_uniform(k3, (d_model, d_model), d_model),
        wo=_uniform(k4, (d_model, d_model), d_model),
    )


# --------------------------- demo --------------------------------------------

if __name__ == "__main__":
    key = jax.random.PRNGKey(0)
    kit = iter(jax.random.split(key, 64))
    nk = lambda: next(kit)

    # Small configuration consistent with the module's __init__ signature.
    B = 2
    channels_2D = [[6, 4]]          # one pyramid level: [box_channels, cls_channels]
    channels_3D = 4
    interchannels = 8
    H3 = W3 = 8                     # 3D feature spatial size
    H2 = W2 = 16                    # 2D feature spatial size (scale factor 2)
    d_model = H2 * W2               # = lastdimension[branch][idx][0] * [1] = 256

    params = {"box": [], "cls": []}
    for ch2d in channels_2D:
        params["box"].append(dict(
            rc2d=init_reduce_channels(nk(), ch2d[0], interchannels),
            rc3d=init_reduce_channels(nk(), channels_3D, interchannels),
            attn=init_mhab(nk(), d_model),
        ))
        params["cls"].append(dict(
            rc2d=init_reduce_channels(nk(), ch2d[1], interchannels),
            rc3d=init_reduce_channels(nk(), channels_3D, interchannels),
            attn=init_mhab(nk(), d_model),
        ))

    ft_2D = [[jax.random.normal(nk(), (B, ch2d[0], H2, W2), jnp.float32),
              jax.random.normal(nk(), (B, ch2d[1], H2, W2), jnp.float32)]
             for ch2d in channels_2D]
    ft_3D = jax.random.normal(nk(), (B, channels_3D, H3, W3), jnp.float32)

    # h=1 matches the module default; h=2 exercises the per-head weight splitting.
    for num_heads in (1, 2):
        fts = multi_head_fusion_forward(params, ft_2D, ft_3D, h=num_heads)
        jax.block_until_ready(fts)
        ref = multi_head_fusion_reference(params, ft_2D, ft_3D, h=num_heads)
        for (kb, kc), (rb, rcl) in zip(fts, ref):
            assert kb.shape == (B, interchannels, H2, W2)
            assert kc.shape == (B, interchannels, H2, W2)
            assert jnp.allclose(kb, rb, rtol=5e-2, atol=5e-2), f"box mismatch (h={num_heads})"
            assert jnp.allclose(kc, rcl, rtol=5e-2, atol=5e-2), f"cls mismatch (h={num_heads})"

    print("KERNEL_OK")
</pallas_src>

<mosaic_0001>
module attributes {stable_mosaic.version = 11 : i64} {
  func.func @_rc_kernel(%arg0: i32, %arg1: i32, %arg2: i32, %arg3: memref<1x1x6x256xbf16, #tpu.memory_space<vmem>>, %arg4: memref<1x8x6xbf16, #tpu.memory_space<vmem>>, %arg5: memref<1x8x1xf32, #tpu.memory_space<vmem>>, %arg6: memref<1x8x8xbf16, #tpu.memory_space<vmem>>, %arg7: memref<1x8x1xf32, #tpu.memory_space<vmem>>, %arg8: memref<1x1x8x256xbf16, #tpu.memory_space<vmem>>) attributes {dimension_semantics = [#tpu.dimension_semantics<parallel>, #tpu.dimension_semantics<parallel>, #tpu.dimension_semantics<parallel>], iteration_bounds = array<i64: 2, 2, 1>, scalar_prefetch = 0 : i64, scratch_operands = 0 : i64, tpu.core_type = #tpu.core_type<tc>, window_params = [{transform_indices = @transform_0, window_bounds = array<i64: 1, 1, 6, 256>}, {transform_indices = @transform_1, window_bounds = array<i64: 1, 8, 6>}, {transform_indices = @transform_2, window_bounds = array<i64: 1, 8, 1>}, {transform_indices = @transform_3, window_bounds = array<i64: 1, 8, 8>}, {transform_indices = @transform_4, window_bounds = array<i64: 1, 8, 1>}, {transform_indices = @transform_5, window_bounds = array<i64: 1, 1, 8, 256>}]} {
    %c0 = arith.constant 0 : index
    %c0_0 = arith.constant 0 : index
    %c0_1 = arith.constant 0 : index
    %c0_2 = arith.constant 0 : index
    %0 = vector.load %arg3[%c0, %c0_0, %c0_1, %c0_2] : memref<1x1x6x256xbf16, #tpu.memory_space<vmem>>, vector<1x1x6x256xbf16>
    %1 = vector.shape_cast %0 : vector<1x1x6x256xbf16> to vector<6x256xbf16>
    %c0_3 = arith.constant 0 : index
    %c0_4 = arith.constant 0 : index
    %c0_5 = arith.constant 0 : index
    %2 = vector.load %arg4[%c0_3, %c0_4, %c0_5] : memref<1x8x6xbf16, #tpu.memory_space<vmem>>, vector<1x8x6xbf16>
    %3 = vector.shape_cast %2 : vector<1x8x6xbf16> to vector<8x6xbf16>
    %cst = arith.constant dense<0.000000e+00> : vector<8x256xf32>
    %4 = tpu.matmul %3, %1, %cst {dimension_numbers = #tpu.dot_dimension_numbers<[1], [0], [0], [1], [0, 0, 1, 1], [], []>} : vector<8x6xbf16>, vector<6x256xbf16>, vector<8x256xf32> -> vector<8x256xf32>
    %c0_6 = arith.constant 0 : index
    %c0_7 = arith.constant 0 : index
    %c0_8 = arith.constant 0 : index
    %5 = vector.load %arg5[%c0_6, %c0_7, %c0_8] : memref<1x8x1xf32, #tpu.memory_space<vmem>>, vector<1x8x1xf32>
    %6 = vector.shape_cast %5 : vector<1x8x1xf32> to vector<8x1xf32>
    %7 = vector.broadcast %6 : vector<8x1xf32> to vector<8x256xf32>
    %8 = arith.addf %4, %7 : vector<8x256xf32>
    %cst_9 = arith.constant 0.000000e+00 : f32
    %9 = vector.broadcast %cst_9 : f32 to vector<8x256xf32>
    %10 = arith.maximumf %8, %9 : vector<8x256xf32>
    %c0_10 = arith.constant 0 : index
    %c0_11 = arith.constant 0 : index
    %c0_12 = arith.constant 0 : index
    %11 = vector.load %arg6[%c0_10, %c0_11, %c0_12] : memref<1x8x8xbf16, #tpu.memory_space<vmem>>, vector<1x8x8xbf16>
    %12 = vector.shape_cast %11 : vector<1x8x8xbf16> to vector<8x8xbf16>
    %13 = arith.truncf %10 : vector<8x256xf32> to vector<8x256xbf16>
    %cst_13 = arith.constant dense<0.000000e+00> : vector<8x256xf32>
    %14 = tpu.matmul %12, %13, %cst_13 {dimension_numbers = #tpu.dot_dimension_numbers<[1], [0], [0], [1], [0, 0, 1, 1], [], []>} : vector<8x8xbf16>, vector<8x256xbf16>, vector<8x256xf32> -> vector<8x256xf32>
    %c0_14 = arith.constant 0 : index
    %c0_15 = arith.constant 0 : index
    %c0_16 = arith.constant 0 : index
    %15 = vector.load %arg7[%c0_14, %c0_15, %c0_16] : memref<1x8x1xf32, #tpu.memory_space<vmem>>, vector<1x8x1xf32>
    %16 = vector.shape_cast %15 : vector<1x8x1xf32> to vector<8x1xf32>
    %17 = vector.broadcast %16 : vector<8x1xf32> to vector<8x256xf32>
    %18 = arith.addf %14, %17 : vector<8x256xf32>
    %cst_17 = arith.constant 0.000000e+00 : f32
    %19 = vector.broadcast %cst_17 : f32 to vector<8x256xf32>
    %20 = arith.maximumf %18, %19 : vector<8x256xf32>
    %21 = arith.truncf %20 : vector<8x256xf32> to vector<8x256xbf16>
    %c0_18 = arith.constant 0 : index
    %c0_19 = arith.constant 0 : index
    %c0_20 = arith.constant 0 : index
    %c0_21 = arith.constant 0 : index
    %22 = vector.load %arg8[%c0_18, %c0_19, %c0_20, %c0_21] : memref<1x1x8x256xbf16, #tpu.memory_space<vmem>>, vector<1x1x8x256xbf16>
    %23 = vector.shape_cast %22 : vector<1x1x8x256xbf16> to vector<8x256xbf16>
    %24 = vector.shape_cast %21 : vector<8x256xbf16> to vector<1x1x8x256xbf16>
    tpu.vector_store %arg8[%c0_18, %c0_19, %c0_20, %c0_21], %24 {strides = array<i32>} : memref<1x1x8x256xbf16, #tpu.memory_space<vmem>>, vector<1x1x8x256xbf16>,
    return
  }
  func.func @transform_0(%arg0: i32, %arg1: i32, %arg2: i32) -> (i32, i32, i32, i32) {
    %c0_i32 = arith.constant 0 : i32
    %c0_i32_0 = arith.constant 0 : i32
    return %arg0, %arg1, %c0_i32, %arg2 : i32, i32, i32, i32
  }
  func.func @transform_1(%arg0: i32, %arg1: i32, %arg2: i32) -> (i32, i32, i32) {
    %c0_i32 = arith.constant 0 : i32
    %c0_i32_0 = arith.constant 0 : i32
    %c0_i32_1 = arith.constant 0 : i32
    return %arg0, %c0_i32, %c0_i32_0 : i32, i32, i32
  }
  func.func @transform_2(%arg0: i32, %arg1: i32, %arg2: i32) -> (i32, i32, i32) {
    %c0_i32 = arith.constant 0 : i32
    %c0_i32_0 = arith.constant 0 : i32
    %c0_i32_1 = arith.constant 0 : i32
    return %arg0, %c0_i32, %c0_i32_0 : i32, i32, i32
  }
  func.func @transform_3(%arg0: i32, %arg1: i32, %arg2: i32) -> (i32, i32, i32) {
    %c0_i32 = arith.constant 0 : i32
    %c0_i32_0 = arith.constant 0 : i32
    %c0_i32_1 = arith.constant 0 : i32
    return %arg0, %c0_i32, %c0_i32_0 : i32, i32, i32
  }
  func.func @transform_4(%arg0: i32, %arg1: i32, %arg2: i32) -> (i32, i32, i32) {
    %c0_i32 = arith.constant 0 : i32
    %c0_i32_0 = arith.constant 0 : i32
    %c0_i32_1 = arith.constant 0 : i32
    return %arg0, %c0_i32, %c0_i32_0 : i32, i32, i32
  }
  func.func @transform_5(%arg0: i32, %arg1: i32, %arg2: i32) -> (i32, i32, i32, i32) {
    %c0_i32 = arith.constant 0 : i32
    %c0_i32_0 = arith.constant 0 : i32
    return %arg0, %arg1, %c0_i32, %arg2 : i32, i32, i32, i32
  }
}

</mosaic_0001>

<bundles_post_ra>
// kernel: tpu_custom_call.1
= control target key start
LH: loop header
LB: loop body
LE: loop exit
PB: predicated region body
PF: predicated region fallthrough
CT: control target
= control target key end

     0   :  { %10 = vsyncpa [#allocation3], 0  ;;  %s969_s0 = inlined_call_operand.vmem [shape: bf16[2,2,6,256], index: 0, kind: input, shape index: {}]   ;;  %s970_s1 = inlined_call_operand.vmem [shape: bf16[2,8,6], index: 1, kind: input, shape index: {}]   ;;  %s971_s2 = inlined_call_operand.vmem [shape: f32[2,8,1], index: 2, kind: input, shape index: {}]   ;;  %s972_s3 = inlined_call_operand.vmem [shape: bf16[2,8,8], index: 3, kind: input, shape index: {}]   ;;  %s973_s4 = inlined_call_operand.vmem [shape: f32[2,8,1], index: 4, kind: input, shape index: {}]   ;;  %s974_s5 = inlined_call_operand.hbm [shape: bf16[2,2,8,256], index: 5, kind: output, shape index: {}]  }
   0x1   :  { %12 = vsyncpa [#allocation3 + $0x1], 0  ;;  %s830_s18 = smov 0   ;;  %s832_s19 = smov 0  }
   0x2   :  { %s834_s20 = smov 0   ;;  %s836_s21 = smov 0  }
   0x3   :  { %s838_s22 = smov 0   ;;  %s840_s23 = smov 0  }
   0x4   :  { %s842_s24 = smov 0   ;;  %s844_s25 = smov 0  }
   0x5 LB: > { %978 = sst [smem:[#allocation5_spill]] %s793_s24  ;;  %s607_s26 = sadd.s32 4294967295, %s797_s25   ;;  %s797_s25 = sphi %s844_s25, %s18_s25   ;;  %s793_s24 = sphi %s842_s24, %s985_s24   ;;  %s789_s23 = sphi %s840_s23, %s990_s23   ;;  %s785_s22 = sphi %s838_s22, %s983_s22   ;;  %s781_s21 = sphi %s836_s21, %s989_s21   ;;  %s777_s20 = sphi %s834_s20, %s988_s20   ;;  %s773_s19 = sphi %s832_s19, %s987_s19   ;;  %s769_s18 = sphi %s830_s18, %s986_s18  }
   0x6   : > { %s608_s27 = sadd.s32 4294967294, %s797_s25   ;;  %s33_s28 = sadd.s32 1, %s789_s23 }
   0x7   : > { %p35_p0 = scmp.ge.s32.totalorder %s33_s28, 2  ;;  %s37_s29 = sadd.s32 1, %s793_s24 }
   0x8   : > { %p192_p1 = scmp.ne.s32.totalorder %s777_s20, %s773_s19  ;;  %p193_p2 = scmp.eq.s32.totalorder %s607_s26, 3 }
   0x9   : > { %s992_s28 = smov (%p35_p0, %s33_s28), 0  ;;  %s994_s29 = smov (!%p35_p0, %s37_s29), %s793_s24 }
   0xa   : > { %979 = sst [smem:[#allocation6_spill]] %s992_s28  ;;  %s176_s30 = ssub.s32 %s789_s23, %s992_s28 }
   0xb   : > { %p881_p3 = por %p193_p2, %p192_p1  ;;  %p39_p4 = scmp.ge.s32.totalorder %s994_s29, 2 }
   0xc   : > { %p198_p5 = scmp.ne.s32.totalorder %s773_s19, %s769_s18  ;;  %p199_p6 = scmp.eq.s32.totalorder %s608_s27, 3 }
   0xd   : > { %p611_p7 = scmp.ge.s32.totalorder %s797_s25, 1  ;;  %s996_s29 = smov (%p39_p4, %s994_s29), 0 }
   0xe   : > { %981 = sst [smem:[#allocation7_spill]] %s996_s29  ;;  %p890_p8 = por %p199_p6, %p198_p5 }
   0xf   : > { %p262_p9 = scmp.lt.s32.totalorder %s797_s25, 5  ;;  %s175_s8 = ssub.s32 %s793_s24, %s996_s29 }
  0x10   : > { %s182_s9 = sadd.s32 1, %s777_s20  ;;  %s177_s10 = sor.u32 %s176_s30, %s175_s8 }
  0x11   : > { %p263_p10 = pnand %p611_p7, %p262_p9  ;;  %p180_p11 = scmp.eq.s32.totalorder %s177_s10, 0 }
  0x12   : > { %p315_p12 = scmp.lt.s32.totalorder (!%p263_p10), %s785_s22, 1  ;;  %p317_p13 = scmp.lt.s32.totalorder (!%p263_p10), %s781_s21, 1 }
  0x13   : > { %s899_s11 = scalar_select %p180_p11, %s777_s20, %s182_s9  }
  0x14   : > { %266 = sbr.rel (%p263_p10) target bundleno = 319 (0x13f), region = 40  ;;  %s626_s26 = sshll.u32 (!%p263_p10), %s785_s22, 2 }
  0x15   : > { %s311_s27 = sand.u32 (!%p263_p10), 1, %s773_s19  }
  0x19   : > { %v799_v0 = vmov 0   ;;  %s316_s12 = scalar_select %p315_p12, %s785_s22, 1  ;;  %vm363_vm0 = vcmask 1042432   ;;  %vm359_vm1 = vcmask 48128   ;;  %vm411_vm2 = vcmask 1043456  }
  0x1a   : > { %702 = vset.pattern.permute.xlu0 %v799_v0  ;;  %s318_s13 = scalar_select %p317_p13, %s781_s21, 1  ;;  %vm407_vm3 = vcmask 64512  }
  0x1b   : > { %s905_s14 = sshll.u32 %s316_s12, 2  ;;  %s617_s15 = sshll.u32 %s316_s12, 3 }
  0x1c   : > { %s613_s16 = sshll.u32 %s318_s13, 1  ;;  %s335_s30 = scalar_lea.vmem %s971_s2, %s617_s15 }
  0x1d   : > { %s324_s17 = sadd.s32 %s905_s14, %s613_s16  ;;  %v348_v1 = vld [vmem:[%s335_s30] sm:$0xff]  ;;  %s343_s12 = scalar_lea.vmem %s973_s4, %s617_s15 }
  0x1e   : > { %s615_s8 = sshll.u32 %s324_s17, 2  ;;  %351 = vperm.xlu0 %702, %v348_v1   ;;  %s331_s17 = scalar_lea.vmem %s970_s1, %s905_s14  ;;  %v401_v7 = vld [vmem:[%s343_s12] sm:$0xff] }
  0x1f   : > { %s326_s29 = scalar_lea.vmem %s969_s0, %s615_s8  ;;  %v347_v10 = vld [vmem:[%s331_s17] sm:$0xf]  ;;  %s625_s15 = sshll.u32 %s781_s21, 1 }
  0x20   : > { %v346_v2 = vld [vmem:[%s326_s29] sm:$0x77]  ;;  %s339_s29 = scalar_lea.vmem %s972_s3, %s905_s14  ;;  %s462_s30 = sadd.s32 %s626_s26, %s625_s15 }
  0x21   : > { %v355_v3 = vunpack.c.l.b16 %v346_v2  ;;  %v356_v4 = vunpack.c.h.b16 %v346_v2  ;;  %v398_v24 = vld [vmem:[%s339_s29] sm:$0xf]  ;;  %s612_s8 = sshll.u32 %s311_s27, 3  ;;  %s627_s9 = sshll.u32 %s462_s30, 2 }
  0x22   : > { %s464_s14 = scalar_lea.hbm %s974_s5, %s627_s9  ;;  %s313_s13 = scalar_lea.vmem [#allocation2], %s612_s8 }
  0x23   : > { %v357_v5 = vpack.c.b16 %v355_v3, %v355_v3  ;;  %v358_v6 = vpack.c.b16 %v356_v4, %v356_v4  ;;  %s466_s16 = sshll.u32 %s313_s13, 4  ;;  %s468_s17 = sshll.u32 %s464_s14, 4  ;;  %s467_s16 = int_to_ptr.vmem [resolvable:$true] %s466_s16  ;;  %s469_s17 = int_to_ptr.hbm [resolvable:$true] %s468_s17 }
  0x24   : > { %s449_s21 = scalar_lea.sflag [#allocation3], %s311_s27  ;;  %s717_s22 = sshra.s32 %s469_s17, 4  ;;  %s718_s22 = int_to_ptr.hbm [resolvable:$true] %s717_s22 }
  0x25   : > { %v365_v8 = vsel %vm363_vm0, %v357_v5, 0  ;;  %v368_v9 = vsel %vm363_vm0, %v358_v6, 0  ;;  %s719_s24 = scalar_lea.hbm %s718_s22, 8  ;;  %s723_s15 = scalar_lea.hbm %s974_s5, 32 }
  0x26   : > { %377 = vmatpush.bf16.msra.mxu0 %v365_v8  ;;  %390 = vmatpush.bf16.msra.mxu1 %v368_v9  ;;  %p720_p0 = scmp.ne.s32.totalorder %s718_s22, %s719_s24  ;;  %p724_p4 = scmp.lt.s32.totalorder %s718_s22, %s974_s5 }
  0x27   : > { %404 = vperm.xlu0 %702, %v401_v7   ;;  %p725_p5 = scmp.lt.s32.totalorder %s723_s15, %s719_s24 }
  0x28   : > { %p721_p1 = pnand %p720_p0, %p881_p3 }
  0x29   : > { %620 = vmatmul.msk.bf16.vlgmr.msra.gmra.mxu0 %vm359_vm1, %v347_v10  ;;  %621 = vmatmul.msk.bf16.vlgmr.msra.gmra.mxu1 %vm359_vm1, %v347_v10  ;;  %p726_p6 = por %p725_p5, %p724_p4 }
  0x2a   : > { %p722_p2 = pneg %p721_p1 }
  0x2c   : > { %p727_p7 = pnand %p726_p6, %p722_p2 }
  0x90   : > { %v352_v11 = vpop.permute.xlu0 %351 }
  0x99   : > { %v405_v25 = vpop.permute.xlu0 %404 }
  0xa6   : > { %v379_v12 = vpop.f32.mrf.mxu0  ;;  %v392_v13 = vpop.f32.mrf.mxu1 }
  0xa7   : > { %v380_v14 = vadd.f32 %v379_v12, %v352_v11  ;;  %v393_v15 = vadd.f32 %v392_v13, %v352_v11 }
  0xa9   : > { %v396_v16 = vmax.f32 %v380_v14, 0.0  ;;  %v397_v17 = vmax.f32 %v393_v15, 0.0 }
  0xab   : > { %v399_v18 = vpack.c.bf16 %v396_v16, %v396_v16  ;;  %v400_v19 = vpack.c.bf16 %v397_v17, %v397_v17 }
  0xad   : > { %v413_v20 = vsel %vm411_vm2, %v399_v18, 0  ;;  %v416_v21 = vsel %vm411_vm2, %v400_v19, 0 }
  0xae   : > { %v381_v22 = vpop.f32.mrf.mxu0  ;;  %v394_v23 = vpop.f32.mrf.mxu1  ;;  %425 = vmatpush.bf16.msra.mxu2 %v413_v20  ;;  %438 = vmatpush.bf16.msra.mxu3 %v416_v21 }
  0xb1   : > { %622 = vmatmul.msk.bf16.vlgmr.msra.gmra.mxu2 %vm407_vm3, %v398_v24  ;;  %623 = vmatmul.msk.bf16.vlgmr.msra.gmra.mxu3 %vm407_vm3, %v398_v24 }
 0x134   : > { %v427_v26 = vpop.f32.mrf.mxu2  ;;  %v440_v27 = vpop.f32.mrf.mxu3 }
 0x135   : > { %v428_v28 = vadd.f32 %v427_v26, %v405_v25  ;;  %v441_v29 = vadd.f32 %v440_v27, %v405_v25 }
 0x137   : > { %v444_v30 = vmax.f32 %v428_v28, 0.0  ;;  %v445_v31 = vmax.f32 %v441_v29, 0.0 }
 0x139   : > { %v446_v32 = vpack.c.bf16 %v445_v31, %v444_v30 }
 0x13b   : > { %447 = vst [vmem:[%s313_s13] sm:$0xff] %v446_v32 }
 0x13c   : > { %v429_v33 = vpop.f32.mrf.mxu2  ;;  %v442_v34 = vpop.f32.mrf.mxu3 }
 0x13d   : > { %730 = shalt.err (!%p727_p7)
}
 0x13e   : > { %630 = dma.vmem_to_hbm [thread:$0]  (%p881_p3), %s467_s16, 128, %s469_s17, %s449_s21  }
 0x13f PF: > { %p636_p9 = scmp.ge.s32.totalorder %s797_s25, 2  ;;  %s480_s27 = sand.u32 1, %s769_s18  }
 0x140   : > { %s481_s8 = scalar_lea.sflag [#allocation3], %s480_s27 }
 0x141   : > { %p633_p10 = pnand %p636_p9, %p890_p8 }
 0x143   : > { %p634_p11 = pneg %p633_p10 }
 0x145   : > { %764 = dma.done.wait (%p634_p11), %s481_s8, 128  }
 0x146   : > { %766 = vsyncadd (%p634_p11), %s481_s8, 4294967168  ;;  %s18_s25 = sadd.s32 1, %s797_s25   ;;  %s983_s22 = sld [smem:[#allocation5_spill]] }
 0x147   : > { %p15_p12 = scmp.ge.s32.totalorder %s18_s25, 6   ;;  %s984_s6 = sld [smem:[#allocation6_spill]] }
 0x148   : > { %s985_s24 = sld [smem:[#allocation7_spill]]  ;;  %s986_s18 = smov %s773_s19 }
 0x149   : > { %s987_s19 = smov %s777_s20  ;;  %s988_s20 = smov %s899_s11 }
 0x14a   : > { %s989_s21 = smov %s789_s23  ;;  %17 = sbr.rel (!%p15_p12) target bundleno = 5 (0x5), region = 87 }
 0x14d   : > { %s990_s23 = smov %s984_s6 }
 0x14f   :  { %487 = vsyncpa [#allocation3], 1 }
 0x150   :  { %489 = vsyncpa [#allocation3 + $0x1], 1 }

</bundles_post_ra>
